<compile_context>
chip_gen: v6e
topology: v6e:2x2x1
jax: 0.10.0
libtpu: 0.0.40
codegen_flags: <defaults>
</compile_context>

<pallas_src>
import functools

import jax
import jax.numpy as jnp
from jax.experimental import pallas as pl
from jax.experimental.pallas import tpu as pltpu


def mlp_classifier_kernel(num_classes, x_ref, w1_ref, b1_ref, w2_ref, b2_ref,
                          w3_ref, b3_ref, o_ref):
    # x arrives as f32 (single DMA of the original array); cast to bf16 in-kernel.
    x = x_ref[...].astype(jnp.bfloat16)              # (TB, H)

    # fc1 + ReLU  (bf16 MXU matmul, f32 accumulation)
    h1 = jnp.dot(x, w1_ref[...], preferred_element_type=jnp.float32) + b1_ref[...]
    h1 = jnp.maximum(h1, 0.0).astype(jnp.bfloat16)   # (TB, 512)

    # fc2 + ReLU
    h2 = jnp.dot(h1, w2_ref[...], preferred_element_type=jnp.float32) + b2_ref[...]
    h2 = jnp.maximum(h2, 0.0).astype(jnp.bfloat16)   # (TB, 128)

    # fc3 logits over 128 lane-padded classes (padded cols: w=0, bias=-1e30, f32)
    logits = jnp.dot(h2, w3_ref[...], preferred_element_type=jnp.float32) + b3_ref[...]

    # numerically stable softmax (f32); padded columns exp() -> exactly 0
    m = jnp.max(logits, axis=1, keepdims=True)
    e = jnp.exp(logits - m)
    inv = pl.reciprocal(jnp.sum(e, axis=1, keepdims=True), approx=True)
    probs = e * inv

    # store only the real classes: for tiny num_classes this cuts HBM writeback by
    # up to 64x vs a 128-lane-padded f32 store (kernel is memory-bound).
    o_ref[...] = probs[:, :num_classes].astype(o_ref.dtype)


def _round_up(n, m):
    return ((n + m - 1) // m) * m


def _choose_tb(batch, block_batch):
    """Batch tile: multiple of 16 (8 for toy batches), <= block_batch, minimal
    padding waste, and >= 2 grid steps when the batch allows (v7x dual-TC)."""
    if batch <= 32:
        return _round_up(batch, 8)
    cap = min(block_batch, max(16, (_round_up(batch, 16) // 2) // 16 * 16))
    cands = sorted({c for c in (64, 128, 256, 512, 1024) if c <= cap} | {cap})
    # minimal padded rows; break ties toward the largest tile (~85% HBM roofline
    # at 512-row tiles on v6e, per measured tiling data).
    return min(cands, key=lambda c: (_round_up(batch, c) - batch, -c))


_SINGLE_BUFFER_RESIDENT_OK = [True]  # flipped off if pl.Buffered(1) is unsupported


def _forward(xf, w1b, b1f, w2b, b2f, w3b, b3p, *, tb, num_classes,
             single_buffer_resident):
    batch_p, hidden = xf.shape
    c_pad = w3b.shape[1]

    res_kw = {"pipeline_mode": pl.Buffered(1)} if single_buffer_resident else {}

    def resident(shape):
        # constant index_map -> fetched once, stays VMEM-resident across the grid
        return pl.BlockSpec(shape, lambda i: (0, 0), **res_kw)

    flops = 2 * batch_p * (hidden * 512 + 512 * 128 + 128 * c_pad)
    bytes_accessed = (xf.size * 4
                      + (w1b.size + w2b.size + w3b.size) * 2
                      + (b1f.size + b2f.size + b3p.size) * 4
                      + batch_p * num_classes * 4)

    # TODO(synk): for very large hidden (w1 >> VMEM) add a K-tiling grid axis
    # ("arbitrary") with an f32 h1 accumulator instead of keeping w1 resident.
    return pl.pallas_call(
        functools.partial(mlp_classifier_kernel, num_classes),
        out_shape=jax.ShapeDtypeStruct((batch_p, num_classes), jnp.float32),
        grid=(batch_p // tb,),
        in_specs=[
            pl.BlockSpec((tb, hidden), lambda i: (i, 0)),  # streamed / pipelined
            resident(w1b.shape),
            resident(b1f.shape),
            resident(w2b.shape),
            resident(b2f.shape),
            resident(w3b.shape),
            resident(b3p.shape),
        ],
        out_specs=pl.BlockSpec((tb, num_classes), lambda i: (i, 0)),
        compiler_params=pltpu.CompilerParams(
            dimension_semantics=("parallel",),   # dual-TC sharding on v7x
            vmem_limit_bytes=32 * 1024 * 1024,   # safe on v5e/v6e/v7x
        ),
        cost_estimate=pl.CostEstimate(
            flops=flops,
            transcendentals=batch_p * c_pad,
            bytes_accessed=bytes_accessed),
    )(xf, w1b, b1f, w2b, b2f, w3b, b3p)


def mlp_classifier(x, params, *, block_batch=512):
    """x: (batch, hidden) float32. params: dict of w1,b1,w2,b2,w3,b3 (f32).

    Returns (batch, num_classes) float32 softmax probabilities.
    """
    w1, b1, w2, b2, w3, b3 = (params[k] for k in ("w1", "b1", "w2", "b2", "w3", "b3"))
    batch, hidden = x.shape
    num_classes = w3.shape[1]

    # fc3 lane-padded to 128 columns for MXU/softmax; padded bias = -1e30 (f32,
    # exp underflows to exactly 0). Only real columns are ever written to HBM.
    c_pad = _round_up(max(num_classes, 128), 128)
    w3p = jnp.zeros((w3.shape[0], c_pad), jnp.float32).at[:, :num_classes].set(w3)
    b3p = jnp.full((1, c_pad), -1e30, jnp.float32).at[:, :num_classes].set(
        b3.astype(jnp.float32))

    # batch tiling (see _choose_tb)
    tb = _choose_tb(batch, block_batch)
    batch_p = _round_up(batch, tb)
    xf = x.astype(jnp.float32)
    if batch_p != batch:
        xf = jnp.pad(xf, ((0, batch_p - batch), (0, 0)))

    # weights in bf16 (MXU operands); biases stay f32 (added to f32 accumulators).
    w1b = w1.astype(jnp.bfloat16)
    w2b = w2.astype(jnp.bfloat16)
    w3b = w3p.astype(jnp.bfloat16)
    b1f = b1.astype(jnp.float32)
    b2f = b2.astype(jnp.float32)

    kwargs = dict(tb=tb, num_classes=num_classes)
    if _SINGLE_BUFFER_RESIDENT_OK[0]:
        try:
            out = _forward(xf, w1b, b1f, w2b, b2f, w3b, b3p,
                           single_buffer_resident=True, **kwargs)
        except Exception:
            _SINGLE_BUFFER_RESIDENT_OK[0] = False
            out = _forward(xf, w1b, b1f, w2b, b2f, w3b, b3p,
                           single_buffer_resident=False, **kwargs)
    else:
        out = _forward(xf, w1b, b1f, w2b, b2f, w3b, b3p,
                       single_buffer_resident=False, **kwargs)

    return out[:batch]  # drop batch padding (class axis is already un-padded)


def init_params(key, hidden_size, num_classes=2):
    """Deterministic PyTorch-style uniform(-1/sqrt(fan_in), +1/sqrt(fan_in)) init."""
    ks = jax.random.split(key, 6)

    def lin(kw, kb, fan_in, fan_out):
        bound = 1.0 / jnp.sqrt(jnp.float32(fan_in))
        w = jax.random.uniform(kw, (fan_in, fan_out), jnp.float32, -bound, bound)
        b = jax.random.uniform(kb, (1, fan_out), jnp.float32, -bound, bound)
        return w, b

    w1, b1 = lin(ks[0], ks[1], hidden_size, 512)
    w2, b2 = lin(ks[2], ks[3], 512, 128)
    w3, b3 = lin(ks[4], ks[5], 128, num_classes)
    return {"w1": w1, "b1": b1, "w2": w2, "b2": b2, "w3": w3, "b3": b3}


def _reference(x, params):
    w1, b1, w2, b2, w3, b3 = (params[k] for k in ("w1", "b1", "w2", "b2", "w3", "b3"))
    h1 = jnp.maximum(x @ w1 + b1, 0.0)
    h2 = jnp.maximum(h1 @ w2 + b2, 0.0)
    logits = h2 @ w3 + b3
    return jax.nn.softmax(logits, axis=1)


if __name__ == "__main__":
    key = jax.random.PRNGKey(0)
    k_x, k_p = jax.random.split(key)

    batch, hidden_size, num_classes = 8, 32, 2
    x = jax.random.normal(k_x, (batch, hidden_size), jnp.float32)
    params = init_params(k_p, hidden_size, num_classes)

    out = jax.block_until_ready(mlp_classifier(x, params))

    # sanity checks: shape, rows sum to ~1 (approx reciprocal), and matches the
    # f32 reference within bf16-matmul tolerance.
    assert out.shape == (batch, num_classes)
    assert bool(jnp.all(jnp.abs(jnp.sum(out, axis=1) - 1.0) < 5e-3))
    ref = _reference(x, params)
    assert float(jnp.max(jnp.abs(out - ref))) < 5e-2

    print("KERNEL_OK")
</pallas_src>

<mosaic_0001>
module attributes {stable_mosaic.version = 11 : i64} {
  func.func @mlp_classifier_kernel(%arg0: i32, %arg1: memref<8x32xf32, #tpu.memory_space<vmem>>, %arg2: memref<32x512xbf16, #tpu.memory_space<vmem>>, %arg3: memref<1x512xf32, #tpu.memory_space<vmem>>, %arg4: memref<512x128xbf16, #tpu.memory_space<vmem>>, %arg5: memref<1x128xf32, #tpu.memory_space<vmem>>, %arg6: memref<128x128xbf16, #tpu.memory_space<vmem>>, %arg7: memref<1x128xf32, #tpu.memory_space<vmem>>, %arg8: memref<8x2xf32, #tpu.memory_space<vmem>>) attributes {dimension_semantics = [#tpu.dimension_semantics<parallel>], iteration_bounds = array<i64: 1>, scalar_prefetch = 0 : i64, scratch_operands = 0 : i64, tpu.core_type = #tpu.core_type<tc>, window_params = [{transform_indices = @transform_0, window_bounds = array<i64: 8, 32>}, {pipeline_mode = #tpu.pipeline_mode<synchronous>, transform_indices = @transform_1, window_bounds = array<i64: 32, 512>}, {pipeline_mode = #tpu.pipeline_mode<synchronous>, transform_indices = @transform_2, window_bounds = array<i64: 1, 512>}, {pipeline_mode = #tpu.pipeline_mode<synchronous>, transform_indices = @transform_3, window_bounds = array<i64: 512, 128>}, {pipeline_mode = #tpu.pipeline_mode<synchronous>, transform_indices = @transform_4, window_bounds = array<i64: 1, 128>}, {pipeline_mode = #tpu.pipeline_mode<synchronous>, transform_indices = @transform_5, window_bounds = array<i64: 128, 128>}, {pipeline_mode = #tpu.pipeline_mode<synchronous>, transform_indices = @transform_6, window_bounds = array<i64: 1, 128>}, {transform_indices = @transform_7, window_bounds = array<i64: 8, 2>}]} {
    %c0 = arith.constant 0 : index
    %c0_0 = arith.constant 0 : index
    %0 = vector.load %arg1[%c0, %c0_0] : memref<8x32xf32, #tpu.memory_space<vmem>>, vector<8x32xf32>
    %1 = arith.truncf %0 : vector<8x32xf32> to vector<8x32xbf16>
    %c0_1 = arith.constant 0 : index
    %c0_2 = arith.constant 0 : index
    %2 = vector.load %arg2[%c0_1, %c0_2] : memref<32x512xbf16, #tpu.memory_space<vmem>>, vector<32x512xbf16>
    %cst = arith.constant dense<0.000000e+00> : vector<8x512xf32>
    %3 = tpu.matmul %1, %2, %cst {dimension_numbers = #tpu.dot_dimension_numbers<[1], [0], [0], [1], [0, 0, 1, 1], [], []>} : vector<8x32xbf16>, vector<32x512xbf16>, vector<8x512xf32> -> vector<8x512xf32>
    %c0_3 = arith.constant 0 : index
    %c0_4 = arith.constant 0 : index
    %4 = vector.load %arg3[%c0_3, %c0_4] : memref<1x512xf32, #tpu.memory_space<vmem>>, vector<1x512xf32>
    %5 = vector.broadcast %4 : vector<1x512xf32> to vector<8x512xf32>
    %6 = arith.addf %3, %5 : vector<8x512xf32>
    %cst_5 = arith.constant 0.000000e+00 : f32
    %7 = vector.broadcast %cst_5 : f32 to vector<8x512xf32>
    %8 = arith.maximumf %6, %7 : vector<8x512xf32>
    %9 = arith.truncf %8 : vector<8x512xf32> to vector<8x512xbf16>
    %c0_6 = arith.constant 0 : index
    %c0_7 = arith.constant 0 : index
    %10 = vector.load %arg4[%c0_6, %c0_7] : memref<512x128xbf16, #tpu.memory_space<vmem>>, vector<512x128xbf16>
    %cst_8 = arith.constant dense<0.000000e+00> : vector<8x128xf32>
    %11 = tpu.matmul %9, %10, %cst_8 {dimension_numbers = #tpu.dot_dimension_numbers<[1], [0], [0], [1], [0, 0, 1, 1], [], []>} : vector<8x512xbf16>, vector<512x128xbf16>, vector<8x128xf32> -> vector<8x128xf32>
    %c0_9 = arith.constant 0 : index
    %c0_10 = arith.constant 0 : index
    %12 = vector.load %arg5[%c0_9, %c0_10] : memref<1x128xf32, #tpu.memory_space<vmem>>, vector<1x128xf32>
    %13 = vector.broadcast %12 : vector<1x128xf32> to vector<8x128xf32>
    %14 = arith.addf %11, %13 : vector<8x128xf32>
    %cst_11 = arith.constant 0.000000e+00 : f32
    %15 = vector.broadcast %cst_11 : f32 to vector<8x128xf32>
    %16 = arith.maximumf %14, %15 : vector<8x128xf32>
    %17 = arith.truncf %16 : vector<8x128xf32> to vector<8x128xbf16>
    %c0_12 = arith.constant 0 : index
    %c0_13 = arith.constant 0 : index
    %18 = vector.load %arg6[%c0_12, %c0_13] : memref<128x128xbf16, #tpu.memory_space<vmem>>, vector<128x128xbf16>
    %cst_14 = arith.constant dense<0.000000e+00> : vector<8x128xf32>
    %19 = tpu.matmul %17, %18, %cst_14 {dimension_numbers = #tpu.dot_dimension_numbers<[1], [0], [0], [1], [0, 0, 1, 1], [], []>} : vector<8x128xbf16>, vector<128x128xbf16>, vector<8x128xf32> -> vector<8x128xf32>
    %c0_15 = arith.constant 0 : index
    %c0_16 = arith.constant 0 : index
    %20 = vector.load %arg7[%c0_15, %c0_16] : memref<1x128xf32, #tpu.memory_space<vmem>>, vector<1x128xf32>
    %21 = vector.broadcast %20 : vector<1x128xf32> to vector<8x128xf32>
    %22 = arith.addf %19, %21 : vector<8x128xf32>
    %cst_17 = arith.constant dense<0xFF800000> : vector<8xf32>
    %23 = vector.multi_reduction <maximumf>, %22, %cst_17 [1] : vector<8x128xf32> to vector<8xf32>
    %24 = vector.shape_cast %23 : vector<8xf32> to vector<8x1xf32>
    %25 = vector.broadcast %24 : vector<8x1xf32> to vector<8x128xf32>
    %26 = arith.subf %22, %25 : vector<8x128xf32>
    %27 = math.exp %26 : vector<8x128xf32>
    %cst_18 = arith.constant dense<0.000000e+00> : vector<8xf32>
    %28 = vector.multi_reduction <add>, %27, %cst_18 [1] : vector<8x128xf32> to vector<8xf32>
    %29 = vector.shape_cast %28 : vector<8xf32> to vector<8x1xf32>
    %30 = tpu.reciprocal %29 {approx = true} : vector<8x1xf32> -> vector<8x1xf32>
    %31 = vector.broadcast %30 : vector<8x1xf32> to vector<8x128xf32>
    %32 = arith.mulf %27, %31 : vector<8x128xf32>
    %33 = vector.extract_strided_slice %32 {offsets = [0, 0], sizes = [8, 2], strides = [1, 1]} : vector<8x128xf32> to vector<8x2xf32>
    %c0_19 = arith.constant 0 : index
    %c0_20 = arith.constant 0 : index
    %34 = vector.load %arg8[%c0_19, %c0_20] : memref<8x2xf32, #tpu.memory_space<vmem>>, vector<8x2xf32>
    tpu.vector_store %arg8[%c0_19, %c0_20], %33 {strides = array<i32>} : memref<8x2xf32, #tpu.memory_space<vmem>>, vector<8x2xf32>,
    return
  }
  func.func @transform_0(%arg0: i32) -> (i32, i32) {
    %c0_i32 = arith.constant 0 : i32
    %c0_i32_0 = arith.constant 0 : i32
    return %arg0, %c0_i32 : i32, i32
  }
  func.func @transform_1(%arg0: i32) -> (i32, i32) {
    %c0_i32 = arith.constant 0 : i32
    %c0_i32_0 = arith.constant 0 : i32
    %c0_i32_1 = arith.constant 0 : i32
    return %c0_i32, %c0_i32_0 : i32, i32
  }
  func.func @transform_2(%arg0: i32) -> (i32, i32) {
    %c0_i32 = arith.constant 0 : i32
    %c0_i32_0 = arith.constant 0 : i32
    %c0_i32_1 = arith.constant 0 : i32
    return %c0_i32, %c0_i32_0 : i32, i32
  }
  func.func @transform_3(%arg0: i32) -> (i32, i32) {
    %c0_i32 = arith.constant 0 : i32
    %c0_i32_0 = arith.constant 0 : i32
    %c0_i32_1 = arith.constant 0 : i32
    return %c0_i32, %c0_i32_0 : i32, i32
  }
  func.func @transform_4(%arg0: i32) -> (i32, i32) {
    %c0_i32 = arith.constant 0 : i32
    %c0_i32_0 = arith.constant 0 : i32
    %c0_i32_1 = arith.constant 0 : i32
    return %c0_i32, %c0_i32_0 : i32, i32
  }
  func.func @transform_5(%arg0: i32) -> (i32, i32) {
    %c0_i32 = arith.constant 0 : i32
    %c0_i32_0 = arith.constant 0 : i32
    %c0_i32_1 = arith.constant 0 : i32
    return %c0_i32, %c0_i32_0 : i32, i32
  }
  func.func @transform_6(%arg0: i32) -> (i32, i32) {
    %c0_i32 = arith.constant 0 : i32
    %c0_i32_0 = arith.constant 0 : i32
    %c0_i32_1 = arith.constant 0 : i32
    return %c0_i32, %c0_i32_0 : i32, i32
  }
  func.func @transform_7(%arg0: i32) -> (i32, i32) {
    %c0_i32 = arith.constant 0 : i32
    %c0_i32_0 = arith.constant 0 : i32
    return %arg0, %c0_i32 : i32, i32
  }
}

module attributes {stable_mosaic.version = 11 : i64} {
  func.func @mlp_classifier_kernel(%arg0: i32, %arg1: memref<8x32xf32, #tpu.memory_space<vmem>>, %arg2: memref<32x512xbf16, #tpu.memory_space<vmem>>, %arg3: memref<1x512xf32, #tpu.memory_space<vmem>>, %arg4: memref<512x128xbf16, #tpu.memory_space<vmem>>, %arg5: memref<1x128xf32, #tpu.memory_space<vmem>>, %arg6: memref<128x128xbf16, #tpu.memory_space<vmem>>, %arg7: memref<1x128xf32, #tpu.memory_space<vmem>>, %arg8: memref<8x2xf32, #tpu.memory_space<vmem>>) attributes {dimension_semantics = [#tpu.dimension_semantics<parallel>], iteration_bounds = array<i64: 1>, scalar_prefetch = 0 : i64, scratch_operands = 0 : i64, tpu.core_type = #tpu.core_type<tc>, window_params = [{transform_indices = @transform_0, window_bounds = array<i64: 8, 32>}, {pipeline_mode = #tpu.pipeline_mode<synchronous>, transform_indices = @transform_1, window_bounds = array<i64: 32, 512>}, {pipeline_mode = #tpu.pipeline_mode<synchronous>, transform_indices = @transform_2, window_bounds = array<i64: 1, 512>}, {pipeline_mode = #tpu.pipeline_mode<synchronous>, transform_indices = @transform_3, window_bounds = array<i64: 512, 128>}, {pipeline_mode = #tpu.pipeline_mode<synchronous>, transform_indices = @transform_4, window_bounds = array<i64: 1, 128>}, {pipeline_mode = #tpu.pipeline_mode<synchronous>, transform_indices = @transform_5, window_bounds = array<i64: 128, 128>}, {pipeline_mode = #tpu.pipeline_mode<synchronous>, transform_indices = @transform_6, window_bounds = array<i64: 1, 128>}, {transform_indices = @transform_7, window_bounds = array<i64: 8, 2>}]} {
    %c0 = arith.constant 0 : index
    %c0_0 = arith.constant 0 : index
    %0 = vector.load %arg1[%c0, %c0_0] : memref<8x32xf32, #tpu.memory_space<vmem>>, vector<8x32xf32>
    %1 = arith.truncf %0 : vector<8x32xf32> to vector<8x32xbf16>
    %c0_1 = arith.constant 0 : index
    %c0_2 = arith.constant 0 : index
    %2 = vector.load %arg2[%c0_1, %c0_2] : memref<32x512xbf16, #tpu.memory_space<vmem>>, vector<32x512xbf16>
    %cst = arith.constant dense<0.000000e+00> : vector<8x512xf32>
    %3 = tpu.matmul %1, %2, %cst {dimension_numbers = #tpu.dot_dimension_numbers<[1], [0], [0], [1], [0, 0, 1, 1], [], []>} : vector<8x32xbf16>, vector<32x512xbf16>, vector<8x512xf32> -> vector<8x512xf32>
    %c0_3 = arith.constant 0 : index
    %c0_4 = arith.constant 0 : index
    %4 = vector.load %arg3[%c0_3, %c0_4] : memref<1x512xf32, #tpu.memory_space<vmem>>, vector<1x512xf32>
    %5 = vector.broadcast %4 : vector<1x512xf32> to vector<8x512xf32>
    %6 = arith.addf %3, %5 : vector<8x512xf32>
    %cst_5 = arith.constant 0.000000e+00 : f32
    %7 = vector.broadcast %cst_5 : f32 to vector<8x512xf32>
    %8 = arith.maximumf %6, %7 : vector<8x512xf32>
    %9 = arith.truncf %8 : vector<8x512xf32> to vector<8x512xbf16>
    %c0_6 = arith.constant 0 : index
    %c0_7 = arith.constant 0 : index
    %10 = vector.load %arg4[%c0_6, %c0_7] : memref<512x128xbf16, #tpu.memory_space<vmem>>, vector<512x128xbf16>
    %cst_8 = arith.constant dense<0.000000e+00> : vector<8x128xf32>
    %11 = tpu.matmul %9, %10, %cst_8 {dimension_numbers = #tpu.dot_dimension_numbers<[1], [0], [0], [1], [0, 0, 1, 1], [], []>} : vector<8x512xbf16>, vector<512x128xbf16>, vector<8x128xf32> -> vector<8x128xf32>
    %c0_9 = arith.constant 0 : index
    %c0_10 = arith.constant 0 : index
    %12 = vector.load %arg5[%c0_9, %c0_10] : memref<1x128xf32, #tpu.memory_space<vmem>>, vector<1x128xf32>
    %13 = vector.broadcast %12 : vector<1x128xf32> to vector<8x128xf32>
    %14 = arith.addf %11, %13 : vector<8x128xf32>
    %cst_11 = arith.constant 0.000000e+00 : f32
    %15 = vector.broadcast %cst_11 : f32 to vector<8x128xf32>
    %16 = arith.maximumf %14, %15 : vector<8x128xf32>
    %17 = arith.truncf %16 : vector<8x128xf32> to vector<8x128xbf16>
    %c0_12 = arith.constant 0 : index
    %c0_13 = arith.constant 0 : index
    %18 = vector.load %arg6[%c0_12, %c0_13] : memref<128x128xbf16, #tpu.memory_space<vmem>>, vector<128x128xbf16>
    %cst_14 = arith.constant dense<0.000000e+00> : vector<8x128xf32>
    %19 = tpu.matmul %17, %18, %cst_14 {dimension_numbers = #tpu.dot_dimension_numbers<[1], [0], [0], [1], [0, 0, 1, 1], [], []>} : vector<8x128xbf16>, vector<128x128xbf16>, vector<8x128xf32> -> vector<8x128xf32>
    %c0_15 = arith.constant 0 : index
    %c0_16 = arith.constant 0 : index
    %20 = vector.load %arg7[%c0_15, %c0_16] : memref<1x128xf32, #tpu.memory_space<vmem>>, vector<1x128xf32>
    %21 = vector.broadcast %20 : vector<1x128xf32> to vector<8x128xf32>
    %22 = arith.addf %19, %21 : vector<8x128xf32>
    %cst_17 = arith.constant dense<0xFF800000> : vector<8xf32>
    %23 = vector.multi_reduction <maximumf>, %22, %cst_17 [1] : vector<8x128xf32> to vector<8xf32>
    %24 = vector.shape_cast %23 : vector<8xf32> to vector<8x1xf32>
    %25 = vector.broadcast %24 : vector<8x1xf32> to vector<8x128xf32>
    %26 = arith.subf %22, %25 : vector<8x128xf32>
    %27 = math.exp %26 : vector<8x128xf32>
    %cst_18 = arith.constant dense<0.000000e+00> : vector<8xf32>
    %28 = vector.multi_reduction <add>, %27, %cst_18 [1] : vector<8x128xf32> to vector<8xf32>
    %29 = vector.shape_cast %28 : vector<8xf32> to vector<8x1xf32>
    %30 = tpu.reciprocal %29 {approx = true} : vector<8x1xf32> -> vector<8x1xf32>
    %31 = vector.broadcast %30 : vector<8x1xf32> to vector<8x128xf32>
    %32 = arith.mulf %27, %31 : vector<8x128xf32>
    %33 = vector.extract_strided_slice %32 {offsets = [0, 0], sizes = [8, 2], strides = [1, 1]} : vector<8x128xf32> to vector<8x2xf32>
    %c0_19 = arith.constant 0 : index
    %c0_20 = arith.constant 0 : index
    %34 = vector.load %arg8[%c0_19, %c0_20] : memref<8x2xf32, #tpu.memory_space<vmem>>, vector<8x2xf32>
    tpu.vector_store %arg8[%c0_19, %c0_20], %33 {strides = array<i32>} : memref<8x2xf32, #tpu.memory_space<vmem>>, vector<8x2xf32>,
    return
  }
  func.func @transform_0(%arg0: i32) -> (i32, i32) {
    %c0_i32 = arith.constant 0 : i32
    %c0_i32_0 = arith.constant 0 : i32
    return %arg0, %c0_i32 : i32, i32
  }
  func.func @transform_1(%arg0: i32) -> (i32, i32) {
    %c0_i32 = arith.constant 0 : i32
    %c0_i32_0 = arith.constant 0 : i32
    %c0_i32_1 = arith.constant 0 : i32
    return %c0_i32, %c0_i32_0 : i32, i32
  }
  func.func @transform_2(%arg0: i32) -> (i32, i32) {
    %c0_i32 = arith.constant 0 : i32
    %c0_i32_0 = arith.constant 0 : i32
    %c0_i32_1 = arith.constant 0 : i32
    return %c0_i32, %c0_i32_0 : i32, i32
  }
  func.func @transform_3(%arg0: i32) -> (i32, i32) {
    %c0_i32 = arith.constant 0 : i32
    %c0_i32_0 = arith.constant 0 : i32
    %c0_i32_1 = arith.constant 0 : i32
    return %c0_i32, %c0_i32_0 : i32, i32
  }
  func.func @transform_4(%arg0: i32) -> (i32, i32) {
    %c0_i32 = arith.constant 0 : i32
    %c0_i32_0 = arith.constant 0 : i32
    %c0_i32_1 = arith.constant 0 : i32
    return %c0_i32, %c0_i32_0 : i32, i32
  }
  func.func @transform_5(%arg0: i32) -> (i32, i32) {
    %c0_i32 = arith.constant 0 : i32
    %c0_i32_0 = arith.constant 0 : i32
    %c0_i32_1 = arith.constant 0 : i32
    return %c0_i32, %c0_i32_0 : i32, i32
  }
  func.func @transform_6(%arg0: i32) -> (i32, i32) {
    %c0_i32 = arith.constant 0 : i32
    %c0_i32_0 = arith.constant 0 : i32
    %c0_i32_1 = arith.constant 0 : i32
    return %c0_i32, %c0_i32_0 : i32, i32
  }
  func.func @transform_7(%arg0: i32) -> (i32, i32) {
    %c0_i32 = arith.constant 0 : i32
    %c0_i32_0 = arith.constant 0 : i32
    return %arg0, %c0_i32 : i32, i32
  }
}

</mosaic_0001>

<bundles_post_ra>
// kernel: tpu_custom_call.1
= control target key start
LH: loop header
LB: loop body
LE: loop exit
PB: predicated region body
PF: predicated region fallthrough
CT: control target
= control target key end

     0   :  { %12 = vsyncpa [#allocation3], 0  ;;  %s1114_s0 = inlined_call_operand.hbm [shape: f32[8,32], index: 0, kind: input, shape index: {}]   ;;  %s1115_s1 = inlined_call_operand.hbm [shape: bf16[32,512], index: 1, kind: input, shape index: {}]   ;;  %s1116_s2 = inlined_call_operand.hbm [shape: f32[1,512], index: 2, kind: input, shape index: {}]   ;;  %s1117_s3 = inlined_call_operand.hbm [shape: bf16[512,128], index: 3, kind: input, shape index: {}]   ;;  %s1118_s4 = inlined_call_operand.vmem [shape: f32[1,128], index: 4, kind: input, shape index: {}]   ;;  %s1119_s5 = inlined_call_operand.hbm [shape: bf16[128,128], index: 5, kind: input, shape index: {}]   ;;  %s1120_s6 = inlined_call_operand.vmem [shape: f32[1,128], index: 6, kind: input, shape index: {}]   ;;  %s1121_s7 = inlined_call_operand.vmem [shape: f32[8,2], index: 7, kind: output, shape index: {}]  }
   0x1   :  { %13 = vsyncpa [#allocation5], 0 }
   0x2   :  { %14 = vsyncpa [#allocation8], 0  ;;  %s1030_s24 = smov [#allocation4]  }
   0x3   :  { %s30_s25 = sshll.u32 %s1030_s24, 4  ;;  %s31_s25 = int_to_ptr.vmem [resolvable:$true] %s30_s25 }
   0x4   :  { %s932_s26 = scalar_lea.vmem %s31_s25, 1024  ;;  %p937_p1 = scmp.lt.s32.totalorder %s31_s25, %s31_s25 }
   0x5   :  { %p933_p0 = scmp.ne.s32.totalorder %s31_s25, %s932_s26  ;;  %p938_p2 = scmp.lt.s32.totalorder %s932_s26, %s932_s26 }
   0x7   :  { %p939_p3 = por %p938_p2, %p937_p1 }
   0x9   :  { %p940_p4 = pnand %p939_p3, %p933_p0 }
   0xb   :  { %943 = shalt.err (!%p940_p4)
}
   0xc   :  { %s1031_s27 = smov 256   ;;  %s1032_s28 = smov 16  }
   0xd   :  { %36 = dma.hbm_to_vmem [thread:$0]  %s1115_s1, 1024, %s31_s25, [#allocation5], %s1031_s27, %s1031_s27, %s1032_s28  }
   0xe   :  { %s1033_s8 = smov [#allocation7]  }
   0xf   :  { %s52_s9 = sshll.u32 %s1033_s8, 4  ;;  %s53_s9 = int_to_ptr.vmem [resolvable:$true] %s52_s9 }
  0x10   :  { %s952_s10 = scalar_lea.vmem %s53_s9, 4096  ;;  %p957_p6 = scmp.lt.s32.totalorder %s53_s9, %s53_s9 }
  0x11   :  { %p953_p5 = scmp.ne.s32.totalorder %s53_s9, %s952_s10  ;;  %p958_p7 = scmp.lt.s32.totalorder %s952_s10, %s952_s10 }
  0x13   :  { %p959_p8 = por %p958_p7, %p957_p6 }
  0x15   :  { %p960_p9 = pnand %p959_p8, %p953_p5 }
  0x17   :  { %963 = shalt.err (!%p960_p9)
}
  0x18   :  { %s1034_s11 = smov 64   ;;  %s1035_s12 = smov 4  }
  0x19   :  { %58 = dma.hbm_to_vmem [thread:$0]  %s1117_s3, 4096, %s53_s9, [#allocation8], %s1034_s11, %s1034_s11, %s1035_s12  }
  0x1a   :  { %s1036_s1 = smov [#allocation2]   ;;  %s1037_s16 = smov [#allocation6]  }
  0x1b   :  { %s21_s15 = sshll.u32 %s1036_s1, 4  ;;  %s43_s17 = sshll.u32 %s1037_s16, 4  ;;  %s22_s15 = int_to_ptr.vmem [resolvable:$true] %s21_s15  ;;  %s44_s17 = int_to_ptr.vmem [resolvable:$true] %s43_s17 }
  0x1c   :  { %s972_s18 = scalar_lea.vmem %s22_s15, 128  ;;  %p977_p11 = scmp.lt.s32.totalorder %s22_s15, %s22_s15 }
  0x1d   :  { %p973_p10 = scmp.ne.s32.totalorder %s22_s15, %s972_s18  ;;  %p978_p12 = scmp.lt.s32.totalorder %s972_s18, %s972_s18 }
  0x1f   :  { %p979_p13 = por %p978_p12, %p977_p11 }
  0x21   :  { %p980_p0 = pnand %p979_p13, %p973_p10 }
  0x23   :  { %983 = shalt.err (!%p980_p0)
}
  0x24   :  { %24 = dma.hbm_to_vmem [thread:$0]  %s1114_s0, 128, %s22_s15, [#allocation3]  }
  0x25   :  { %s992_s21 = scalar_lea.vmem %s44_s17, 64  ;;  %p997_p2 = scmp.lt.s32.totalorder %s44_s17, %s44_s17 }
  0x26   :  { %p993_p1 = scmp.ne.s32.totalorder %s44_s17, %s992_s21  ;;  %p998_p3 = scmp.lt.s32.totalorder %s992_s21, %s992_s21 }
  0x28   :  { %p999_p4 = por %p998_p3, %p997_p2 }
  0x2a   :  { %p1000_p5 = pnand %p999_p4, %p993_p1 }
  0x2c   :  { %1003 = shalt.err (!%p1000_p5)
}
  0x2d   :  { %46 = dma.hbm_to_vmem [thread:$0]  %s1116_s2, 64, %s44_s17, [#allocation5]  }
  0x2e   :  { %s1038_s23 = smov [#allocation9]  }
  0x2f   :  { %s66_s24 = sshll.u32 %s1038_s23, 4  ;;  %s67_s24 = int_to_ptr.vmem [resolvable:$true] %s66_s24 }
  0x30   :  { %s1012_s25 = scalar_lea.vmem %s67_s24, 1024  ;;  %p1017_p7 = scmp.lt.s32.totalorder %s67_s24, %s67_s24 }
  0x31   :  { %p1013_p6 = scmp.ne.s32.totalorder %s67_s24, %s1012_s25  ;;  %p1018_p8 = scmp.lt.s32.totalorder %s1012_s25, %s1012_s25 }
  0x33   :  { %p1019_p9 = por %p1018_p8, %p1017_p7 }
  0x35   :  { %p1020_p10 = pnand %p1019_p9, %p1013_p6 }
  0x37   :  { %1023 = shalt.err (!%p1020_p10)
}
  0x38   :  { %72 = dma.hbm_to_vmem [thread:$0]  %s1119_s5, 1024, %s67_s24, [#allocation8], %s1034_s11, %s1034_s11, %s1035_s12  }
  0x39   :  { %1024 = dma.done.wait [#allocation3], 128  }
  0x3a   :  { %1025 = vsyncadd [#allocation3], 4294967168 }
  0x3b   :  { %1026 = dma.done.wait [#allocation5], 1088  }
  0x3c   :  { %1027 = vsyncadd [#allocation5], 4294966208 }
  0x3d   :  { %1028 = dma.done.wait [#allocation8], 5120  }
  0x3e   :  { %1029 = vsyncadd [#allocation8], 4294962176  ;;  %v1039_v0 = vmov 0   ;;  %v868_v1 = vld [vmem:[#allocation4 + $0x24] ss:$16 sps:$4 sm:$0xff]   ;;  %v91_v5 = vld [vmem:[#allocation2] sm:$0xff]  ;;  %v103_v44 = vlaneseq }
  0x3f   :  { %199 = vmatprep.mubr.bf16.mxu1 %v1039_v0  ;;  %v870_v2 = vld [vmem:[#allocation4 + $0x20] ss:$16 sps:$4 sm:$0xff]   ;;  %179 = vmatprep.subr.bf16.mxu1 %v868_v1  ;;  %v871_v3 = vld [vmem:[#allocation4 + $0x4] ss:$16 sps:$4 sm:$0xff]   ;;  %v876_v6 = vld [vmem:[#allocation4 + $0x2c] ss:$16 sps:$4 sm:$0xff]   ;;  %v92_v8 = vpack.c.bf16 %v91_v5, %v91_v5 }
  0x40   :  { %v873_v4 = vld [vmem:[#allocation4] ss:$16 sps:$4 sm:$0xff]   ;;  %180 = vmatpush1.bf16.msra.mxu1 %v870_v2  ;;  %v874_v7 = vld [vmem:[#allocation4 + $0x28] ss:$16 sps:$4 sm:$0xff]   ;;  %v879_v9 = vld [vmem:[#allocation4 + $0xc] ss:$16 sps:$4 sm:$0xff]  }
  0x41   :  { %181 = vmatprep.subr.bf16.mxu1 %v871_v3  ;;  %v880_v10 = vld [vmem:[#allocation7 + $0x78] sm:$0xff]   ;;  %vm163_vm0 = vcmask 261120   ;;  %v882_v12 = vld [vmem:[#allocation7 + $0x70] sm:$0xff]   ;;  %v884_v14 = vld [vmem:[#allocation7 + $0x68] sm:$0xff]   ;;  %v1040_v43 = vmov 0.0   ;;  %v104_v45 = vshrl.u32 %v103_v44, 7 }
  0x42   :  { %v881_v11 = vld [vmem:[#allocation7 + $0x38] sm:$0xff]   ;;  %783 = vmatprep.subr.bf16.mxu0 %v880_v10  ;;  %v883_v13 = vld [vmem:[#allocation7 + $0x30] sm:$0xff]   ;;  %v886_v17 = vld [vmem:[#allocation7 + $0x28] sm:$0xff]   ;;  %vm1041_vm1 = vmmov 0   ;;  %vm722_vm2 = vcmask 15360  }
  0x43   :  { %784 = vmatpush3.bf16.msra.mxu0 %v881_v11  ;;  %v877_v15 = vld [vmem:[#allocation4 + $0x8] ss:$16 sps:$4 sm:$0xff]   ;;  %v885_v16 = vld [vmem:[#allocation7 + $0xf8] sm:$0xff]   ;;  %v893_v24 = vld [vmem:[#allocation7 + $0xe8] sm:$0xff]   ;;  %v105_v46 = vsub.s32 0, %v104_v45  ;;  %v109_v48 = vsub.s32 1, %v104_v45 }
  0x44   :  { %182 = vmatpush1.bf16.msra.mxu1 %v873_v4  ;;  %785 = vmatprep.subr.bf16.mxu0 %v882_v12  ;;  %v888_v18 = vld [vmem:[#allocation7 + $0x60] sm:$0xff]   ;;  %v887_v19 = vld [vmem:[#allocation7 + $0xb8] sm:$0xff]   ;;  %v889_v20 = vld [vmem:[#allocation7 + $0xf0] sm:$0xff]   ;;  %v113_v53 = vsub.s32 2, %v104_v45  ;;  %v117_v56 = vsub.s32 3, %v104_v45 }
  0x45   :  { %220 = vmatprep.subr.bf16.mxu1 %v876_v6  ;;  %v890_v21 = vld [vmem:[#allocation7 + $0x20] sm:$0xff]   ;;  %v892_v22 = vld [vmem:[#allocation7 + $0x58] sm:$0xff]   ;;  %v891_v23 = vld [vmem:[#allocation7 + $0xb0] sm:$0xff]  }
  0x46   :  { %v894_v25 = vld [vmem:[#allocation7 + $0x18] sm:$0xff]   ;;  %v896_v26 = vld [vmem:[#allocation7 + $0x50] sm:$0xff]   ;;  %v895_v27 = vld [vmem:[#allocation7 + $0xa8] sm:$0xff]  }
  0x47   :  { %739 = vmatmul.mubr.msk.bf16.vlgmr.msra.gmra.mxu1 %vm163_vm0, %v92_v8  ;;  %786 = vmatpush3.bf16.msra.mxu0 %v883_v13  ;;  %v897_v28 = vld [vmem:[#allocation7 + $0xe0] sm:$0xff]   ;;  %v898_v29 = vld [vmem:[#allocation7 + $0x10] sm:$0xff]   ;;  %v900_v31 = vld [vmem:[#allocation7 + $0x48] sm:$0xff]  }
  0x48   :  { %221 = vmatpush1.bf16.msra.mxu1 %v874_v7  ;;  %240 = vmatprep.mubr.bf16.mxu1 %v1039_v0  ;;  %v899_v30 = vld [vmem:[#allocation7 + $0xa0] sm:$0xff]   ;;  %v901_v32 = vld [vmem:[#allocation7 + $0xd8] sm:$0xff]   ;;  %v902_v33 = vld [vmem:[#allocation7 + $0x8] sm:$0xff]  }
  0x49   :  { %222 = vmatprep.subr.bf16.mxu1 %v879_v9  ;;  %787 = vmatprep.subr.bf16.mxu0 %v884_v14  ;;  %v903_v34 = vld [vmem:[#allocation7 + $0x98] sm:$0xff]   ;;  %v904_v35 = vld [vmem:[#allocation7 + $0x40] sm:$0xff]   ;;  %v905_v36 = vld [vmem:[#allocation7 + $0xd0] sm:$0xff]  }
  0x4a   :  { %v906_v37 = vld [vmem:[#allocation7] sm:$0xff]   ;;  %v907_v38 = vld [vmem:[#allocation7 + $0x90] sm:$0xff]   ;;  %v908_v39 = vld [vmem:[#allocation7 + $0xc8] sm:$0xff]  }
  0x4b   :  { %788 = vmatpush3.bf16.msra.mxu0 %v886_v17  ;;  %v909_v40 = vld [vmem:[#allocation7 + $0x88] sm:$0xff]   ;;  %v910_v41 = vld [vmem:[#allocation7 + $0xc0] sm:$0xff]   ;;  %v101_v47 = vld [vmem:[#allocation6] sm:$0xf] }
  0x4c   :  { %223 = vmatpush1.bf16.msra.mxu1 %v877_v15  ;;  %789 = vmatprep.subr.bf16.mxu0 %v888_v18  ;;  %v911_v42 = vld [vmem:[#allocation7 + $0x80] sm:$0xff]   ;;  %v106_v49 = vrot.slane %v101_v47, %v105_v46  ;;  %v110_v50 = vrot.slane %v101_v47, %v109_v48  ;;  %v114_v59 = vrot.slane %v101_v47, %v113_v53  ;;  %v912_v0 = vld [vmem:[#allocation9 + $0x38] sm:$0xff]   ;;  %v913_v6 = vld [vmem:[#allocation9 + $0x30] sm:$0xff]  }
  0x4d   :  { %805 = vmatprep.subr.bf16.mxu1 %v885_v16  ;;  %v118_v63 = vrot.slane %v101_v47, %v117_v56  ;;  %v914_v12 = vld [vmem:[#allocation9 + $0x28] sm:$0xff]   ;;  %v915_v14 = vld [vmem:[#allocation9 + $0x20] sm:$0xff]   ;;  %v916_v15 = vld [vmem:[#allocation9 + $0x18] sm:$0xff]  }
  0x4e   :  { %v917_v16 = vld [vmem:[#allocation9 + $0x10] sm:$0xff]   ;;  %v918_v17 = vld [vmem:[#allocation9 + $0x8] sm:$0xff]   ;;  %v919_v18 = vld [vmem:[#allocation9] sm:$0xff]  }
  0x4f   :  { %740 = vmatmul.mubr.msk.bf16.vlgmr.msra.gmra.mxu1 %vm163_vm0, %v92_v8  ;;  %790 = vmatpush3.bf16.msra.mxu0 %v890_v21 }
  0x50   :  { %806 = vmatpush3.bf16.msra.mxu1 %v887_v19  ;;  %791 = vmatprep.subr.bf16.mxu0 %v892_v22 }
  0x51   :  { %807 = vmatprep.subr.bf16.mxu1 %v889_v20 }
  0x53   :  { %792 = vmatpush3.bf16.msra.mxu0 %v894_v25 }
  0x54   :  { %808 = vmatpush3.bf16.msra.mxu1 %v891_v23  ;;  %793 = vmatprep.subr.bf16.mxu0 %v896_v26 }
  0x55   :  { %809 = vmatprep.subr.bf16.mxu1 %v893_v24  ;;  %v741_v24 = vld [vmem:[%s1118_s4] ss:$0 sm:$0xff] }
  0x57   :  { %794 = vmatpush3.bf16.msra.mxu0 %v898_v29 }
  0x58   :  { %810 = vmatpush3.bf16.msra.mxu1 %v895_v27  ;;  %795 = vmatprep.subr.bf16.mxu0 %v900_v31 }
  0x59   :  { %811 = vmatprep.subr.bf16.mxu1 %v897_v28 }
  0x5b   :  { %796 = vmatpush3.bf16.msra.mxu0 %v902_v33 }
  0x5c   :  { %812 = vmatpush3.bf16.msra.mxu1 %v899_v30  ;;  %797 = vmatprep.subr.bf16.mxu0 %v904_v35 }
  0x5d   :  { %813 = vmatprep.subr.bf16.mxu1 %v901_v32 }
  0x5f   :  { %798 = vmatpush3.bf16.msra.mxu0 %v906_v37 }
  0x60   :  { %814 = vmatpush3.bf16.msra.mxu1 %v903_v34  ;;  %836 = vmatprep.subr.bf16.mxu0 %v1040_v43  ;;  %v774_v34 = vld [vmem:[%s1120_s6] ss:$0 sm:$0xff] }
  0x61   :  { %815 = vmatprep.subr.bf16.mxu1 %v905_v36 }
  0x64   :  { %816 = vmatpush3.bf16.msra.mxu1 %v907_v38 }
  0x65   :  { %817 = vmatprep.subr.bf16.mxu1 %v908_v39 }
  0x68   :  { %818 = vmatpush3.bf16.msra.mxu1 %v909_v40 }
  0x69   :  { %819 = vmatprep.subr.bf16.mxu1 %v910_v41 }
  0x6c   :  { %820 = vmatpush3.bf16.msra.mxu1 %v911_v42 }
 0x107   :  { %v201_v51 = vpop.f32.mrf.mxu1 }
 0x108   :  { %v202_v52 = vadd.f32 %v201_v51, %v106_v49 }
 0x109   :  { %v203_v54 = vpop.f32.mrf.mxu1 }
 0x10a   :  { %v204_v55 = vadd.f32 %v203_v54, %v110_v50  ;;  %v249_v57 = vmax.f32 %v202_v52, 0.0 }
 0x10b   :  { %v205_v58 = vpop.f32.mrf.mxu1 }
 0x10c   :  { %v250_v60 = vmax.f32 %v204_v55, 0.0  ;;  %v253_v1 = vpack.c.bf16 %v249_v57, %v249_v57 }
 0x10d   :  { %v206_v61 = vpop.f32.mrf.mxu1 }
 0x10e   :  { %v254_v62 = vpack.c.bf16 %v250_v60, %v250_v60 }
 0x10f   :  { %v242_v2 = vpop.f32.mrf.mxu1 }
 0x110   :  { %v243_v3 = vadd.f32 %v242_v2, %v114_v59  ;;  %552 = vmatprep.mubr.bf16.mxu0 %v254_v62 }
 0x111   :  { %v244_v4 = vpop.f32.mrf.mxu1  ;;  %553 = vmatmul.mubr.bf16.vlgmr.msra.gmra.mxu0 %v253_v1 }
 0x112   :  { %v245_v5 = vadd.f32 %v244_v4, %v118_v63  ;;  %837 = vmatpush3.bf16.msra.mxu0 %v912_v0  ;;  %v251_v7 = vmax.f32 %v243_v3, 0.0  ;;  %852 = vmatprep.mubr.msk.bf16.mxu0 %vm1041_vm1, %v1040_v43 }
 0x113   :  { %v246_v8 = vpop.f32.mrf.mxu1  ;;  %838 = vmatprep.subr.bf16.mxu0 %v1040_v43 }
 0x114   :  { %v252_v9 = vmax.f32 %v245_v5, 0.0  ;;  %v255_v13 = vpack.c.bf16 %v251_v7, %v251_v7 }
 0x115   :  { %v247_v10 = vpop.f32.mrf.mxu1 }
 0x116   :  { %v256_v11 = vpack.c.bf16 %v252_v9, %v252_v9  ;;  %839 = vmatpush3.bf16.msra.mxu0 %v913_v6 }
 0x117   :  { %840 = vmatprep.subr.bf16.mxu0 %v1040_v43 }
 0x118   :  { %592 = vmatprep.mubr.bf16.mxu1 %v256_v11 }
 0x119   :  { %593 = vmatmul.mubr.bf16.vlgmr.msra.gmra.mxu1 %v255_v13 }
 0x11a   :  { %841 = vmatpush3.bf16.msra.mxu0 %v914_v12 }
 0x11b   :  { %842 = vmatprep.subr.bf16.mxu0 %v1040_v43 }
 0x11e   :  { %843 = vmatpush3.bf16.msra.mxu0 %v915_v14 }
 0x11f   :  { %844 = vmatprep.subr.bf16.mxu0 %v1040_v43 }
 0x122   :  { %845 = vmatpush3.bf16.msra.mxu0 %v916_v15 }
 0x123   :  { %846 = vmatprep.subr.bf16.mxu0 %v1040_v43 }
 0x126   :  { %847 = vmatpush3.bf16.msra.mxu0 %v917_v16 }
 0x127   :  { %848 = vmatprep.subr.bf16.mxu0 %v1040_v43 }
 0x12a   :  { %849 = vmatpush3.bf16.msra.mxu0 %v918_v17 }
 0x12b   :  { %850 = vmatprep.subr.bf16.mxu0 %v1040_v43 }
 0x12e   :  { %851 = vmatpush3.bf16.msra.mxu0 %v919_v18 }
 0x1d1   :  { %v799_v19 = vpop.f32.mrf.mxu0 }
 0x1d3   :  { %v800_v20 = vpop.f32.mrf.mxu0 }
 0x1d4   :  { %v801_v23 = vadd.f32 %v800_v20, %v799_v19 }
 0x1d5   :  { %v802_v21 = vpop.f32.mrf.mxu0 }
 0x1d6   :  { %v555_v27 = vadd.f32 %v801_v23, %v741_v24 }
 0x1d7   :  { %v803_v22 = vpop.f32.mrf.mxu0 }
 0x1d9   :  { %v821_v25 = vpop.f32.mrf.mxu1 }
 0x1db   :  { %v822_v26 = vpop.f32.mrf.mxu1 }
 0x1dc   :  { %v823_v28 = vadd.f32 %v822_v26, %v821_v25 }
 0x1dd   :  { %v824_v29 = vpop.f32.mrf.mxu1 }
 0x1de   :  { %v595_v30 = vadd.f32 %v823_v28, %v555_v27 }
 0x1df   :  { %v825_v31 = vpop.f32.mrf.mxu1 }
 0x1e0   :  { %v600_v32 = vmax.f32 %v595_v30, 0.0 }
 0x1e2   :  { %v601_v33 = vpack.c.bf16 %v600_v32, %v600_v32 }
 0x1e4   :  { %853 = vmatmul.mubr.bf16.vlgmr.msra.gmra.mxu0 %v601_v33 }
 0x2a4   :  { %v707_v35 = vpop.f32.mrf.mxu0 }
 0x2a5   :  { %v708_v36 = vadd.f32 %v774_v34, %v707_v35 }
 0x2a6   :  { %v854_v37 = vpop.f32.mrf.mxu0 }
 0x2a7   :  { %713 = vmax.xlane.f32.xlu0 %v708_v36 }
 0x2a8   :  { %v710_v38 = vpop.f32.mrf.mxu0 }
 0x2aa   :  { %v855_v39 = vpop.f32.mrf.mxu0 }
 0x330   :  { %v714_v40 = vpop.xlane.xlu0 %713 }
 0x331   :  { %v715_v41 = vsub.f32 %v708_v36, %v714_v40 }
 0x333   :  { %v716_v42 = vmul.f32 1.442695, %v715_v41 }
 0x335   :  { %920 = vpow2.f32 %v716_v42 }
 0x342   :  { %v921_v43 = vpop.eup %920 }
 0x343   :  { %718 = vadd.xlane.f32.xlu0 %v921_v43 }
 0x3cc   :  { %v719_v44 = vpop.xlane.xlu0 %718 }
 0x3cd   :  { %922 = vrcp.f32 %v719_v44 }
 0x3da   :  { %v923_v45 = vpop.eup %922 }
 0x3db   :  { %v721_v46 = vmul.f32 %v923_v45, %v921_v43 }
 0x3dd   :  { %723 = vst.msk [vmem:[%s1121_s7] sm:$0xff] %vm722_vm2, %v721_v46 }
 0x3de   :  { %728 = vsyncpa [#allocation3], 1 }
 0x3df   :  { %729 = vsyncpa [#allocation5], 1 }
 0x3e0   :  { %730 = vsyncpa [#allocation8], 1 }

// kernel: tpu_custom_call.1
= control target key start
LH: loop header
LB: loop body
LE: loop exit
PB: predicated region body
PF: predicated region fallthrough
CT: control target
= control target key end

     0   :  { %12 = vsyncpa [#allocation3], 0  ;;  %s1114_s0 = inlined_call_operand.hbm [shape: f32[8,32], index: 0, kind: input, shape index: {}]   ;;  %s1115_s1 = inlined_call_operand.hbm [shape: bf16[32,512], index: 1, kind: input, shape index: {}]   ;;  %s1116_s2 = inlined_call_operand.hbm [shape: f32[1,512], index: 2, kind: input, shape index: {}]   ;;  %s1117_s3 = inlined_call_operand.hbm [shape: bf16[512,128], index: 3, kind: input, shape index: {}]   ;;  %s1118_s4 = inlined_call_operand.vmem [shape: f32[1,128], index: 4, kind: input, shape index: {}]   ;;  %s1119_s5 = inlined_call_operand.hbm [shape: bf16[128,128], index: 5, kind: input, shape index: {}]   ;;  %s1120_s6 = inlined_call_operand.vmem [shape: f32[1,128], index: 6, kind: input, shape index: {}]   ;;  %s1121_s7 = inlined_call_operand.vmem [shape: f32[8,2], index: 7, kind: output, shape index: {}]  }
   0x1   :  { %13 = vsyncpa [#allocation5], 0 }
   0x2   :  { %14 = vsyncpa [#allocation8], 0  ;;  %s1030_s24 = smov [#allocation4]  }
   0x3   :  { %s30_s25 = sshll.u32 %s1030_s24, 4  ;;  %s31_s25 = int_to_ptr.vmem [resolvable:$true] %s30_s25 }
   0x4   :  { %s932_s26 = scalar_lea.vmem %s31_s25, 1024  ;;  %p937_p1 = scmp.lt.s32.totalorder %s31_s25, %s31_s25 }
   0x5   :  { %p933_p0 = scmp.ne.s32.totalorder %s31_s25, %s932_s26  ;;  %p938_p2 = scmp.lt.s32.totalorder %s932_s26, %s932_s26 }
   0x7   :  { %p939_p3 = por %p938_p2, %p937_p1 }
   0x9   :  { %p940_p4 = pnand %p939_p3, %p933_p0 }
   0xb   :  { %943 = shalt.err (!%p940_p4)
}
   0xc   :  { %s1031_s27 = smov 256   ;;  %s1032_s28 = smov 16  }
   0xd   :  { %36 = dma.hbm_to_vmem [thread:$0]  %s1115_s1, 1024, %s31_s25, [#allocation5], %s1031_s27, %s1031_s27, %s1032_s28  }
   0xe   :  { %s1033_s8 = smov [#allocation7]  }
   0xf   :  { %s52_s9 = sshll.u32 %s1033_s8, 4  ;;  %s53_s9 = int_to_ptr.vmem [resolvable:$true] %s52_s9 }
  0x10   :  { %s952_s10 = scalar_lea.vmem %s53_s9, 4096  ;;  %p957_p6 = scmp.lt.s32.totalorder %s53_s9, %s53_s9 }
  0x11   :  { %p953_p5 = scmp.ne.s32.totalorder %s53_s9, %s952_s10  ;;  %p958_p7 = scmp.lt.s32.totalorder %s952_s10, %s952_s10 }
  0x13   :  { %p959_p8 = por %p958_p7, %p957_p6 }
  0x15   :  { %p960_p9 = pnand %p959_p8, %p953_p5 }
  0x17   :  { %963 = shalt.err (!%p960_p9)
}
  0x18   :  { %s1034_s11 = smov 64   ;;  %s1035_s12 = smov 4  }
  0x19   :  { %58 = dma.hbm_to_vmem [thread:$0]  %s1117_s3, 4096, %s53_s9, [#allocation8], %s1034_s11, %s1034_s11, %s1035_s12  }
  0x1a   :  { %s1036_s1 = smov [#allocation2]   ;;  %s1037_s16 = smov [#allocation6]  }
  0x1b   :  { %s21_s15 = sshll.u32 %s1036_s1, 4  ;;  %s43_s17 = sshll.u32 %s1037_s16, 4  ;;  %s22_s15 = int_to_ptr.vmem [resolvable:$true] %s21_s15  ;;  %s44_s17 = int_to_ptr.vmem [resolvable:$true] %s43_s17 }
  0x1c   :  { %s972_s18 = scalar_lea.vmem %s22_s15, 128  ;;  %p977_p11 = scmp.lt.s32.totalorder %s22_s15, %s22_s15 }
  0x1d   :  { %p973_p10 = scmp.ne.s32.totalorder %s22_s15, %s972_s18  ;;  %p978_p12 = scmp.lt.s32.totalorder %s972_s18, %s972_s18 }
  0x1f   :  { %p979_p13 = por %p978_p12, %p977_p11 }
  0x21   :  { %p980_p0 = pnand %p979_p13, %p973_p10 }
  0x23   :  { %983 = shalt.err (!%p980_p0)
}
  0x24   :  { %24 = dma.hbm_to_vmem [thread:$0]  %s1114_s0, 128, %s22_s15, [#allocation3]  }
  0x25   :  { %s992_s21 = scalar_lea.vmem %s44_s17, 64  ;;  %p997_p2 = scmp.lt.s32.totalorder %s44_s17, %s44_s17 }
  0x26   :  { %p993_p1 = scmp.ne.s32.totalorder %s44_s17, %s992_s21  ;;  %p998_p3 = scmp.lt.s32.totalorder %s992_s21, %s992_s21 }
  0x28   :  { %p999_p4 = por %p998_p3, %p997_p2 }
  0x2a   :  { %p1000_p5 = pnand %p999_p4, %p993_p1 }
  0x2c   :  { %1003 = shalt.err (!%p1000_p5)
}
  0x2d   :  { %46 = dma.hbm_to_vmem [thread:$0]  %s1116_s2, 64, %s44_s17, [#allocation5]  }
  0x2e   :  { %s1038_s23 = smov [#allocation9]  }
  0x2f   :  { %s66_s24 = sshll.u32 %s1038_s23, 4  ;;  %s67_s24 = int_to_ptr.vmem [resolvable:$true] %s66_s24 }
  0x30   :  { %s1012_s25 = scalar_lea.vmem %s67_s24, 1024  ;;  %p1017_p7 = scmp.lt.s32.totalorder %s67_s24, %s67_s24 }
  0x31   :  { %p1013_p6 = scmp.ne.s32.totalorder %s67_s24, %s1012_s25  ;;  %p1018_p8 = scmp.lt.s32.totalorder %s1012_s25, %s1012_s25 }
  0x33   :  { %p1019_p9 = por %p1018_p8, %p1017_p7 }
  0x35   :  { %p1020_p10 = pnand %p1019_p9, %p1013_p6 }
  0x37   :  { %1023 = shalt.err (!%p1020_p10)
}
  0x38   :  { %72 = dma.hbm_to_vmem [thread:$0]  %s1119_s5, 1024, %s67_s24, [#allocation8], %s1034_s11, %s1034_s11, %s1035_s12  }
  0x39   :  { %1024 = dma.done.wait [#allocation3], 128  }
  0x3a   :  { %1025 = vsyncadd [#allocation3], 4294967168 }
  0x3b   :  { %1026 = dma.done.wait [#allocation5], 1088  }
  0x3c   :  { %1027 = vsyncadd [#allocation5], 4294966208 }
  0x3d   :  { %1028 = dma.done.wait [#allocation8], 5120  }
  0x3e   :  { %1029 = vsyncadd [#allocation8], 4294962176  ;;  %v1039_v0 = vmov 0   ;;  %v868_v1 = vld [vmem:[#allocation4 + $0x24] ss:$16 sps:$4 sm:$0xff]   ;;  %v91_v5 = vld [vmem:[#allocation2] sm:$0xff]  ;;  %v103_v44 = vlaneseq }
  0x3f   :  { %199 = vmatprep.mubr.bf16.mxu1 %v1039_v0  ;;  %v870_v2 = vld [vmem:[#allocation4 + $0x20] ss:$16 sps:$4 sm:$0xff]   ;;  %179 = vmatprep.subr.bf16.mxu1 %v868_v1  ;;  %v871_v3 = vld [vmem:[#allocation4 + $0x4] ss:$16 sps:$4 sm:$0xff]   ;;  %v876_v6 = vld [vmem:[#allocation4 + $0x2c] ss:$16 sps:$4 sm:$0xff]   ;;  %v92_v8 = vpack.c.bf16 %v91_v5, %v91_v5 }
  0x40   :  { %v873_v4 = vld [vmem:[#allocation4] ss:$16 sps:$4 sm:$0xff]   ;;  %180 = vmatpush1.bf16.msra.mxu1 %v870_v2  ;;  %v874_v7 = vld [vmem:[#allocation4 + $0x28] ss:$16 sps:$4 sm:$0xff]   ;;  %v879_v9 = vld [vmem:[#allocation4 + $0xc] ss:$16 sps:$4 sm:$0xff]  }
  0x41   :  { %181 = vmatprep.subr.bf16.mxu1 %v871_v3  ;;  %v880_v10 = vld [vmem:[#allocation7 + $0x78] sm:$0xff]   ;;  %vm163_vm0 = vcmask 261120   ;;  %v882_v12 = vld [vmem:[#allocation7 + $0x70] sm:$0xff]   ;;  %v884_v14 = vld [vmem:[#allocation7 + $0x68] sm:$0xff]   ;;  %v1040_v43 = vmov 0.0   ;;  %v104_v45 = vshrl.u32 %v103_v44, 7 }
  0x42   :  { %v881_v11 = vld [vmem:[#allocation7 + $0x38] sm:$0xff]   ;;  %783 = vmatprep.subr.bf16.mxu0 %v880_v10  ;;  %v883_v13 = vld [vmem:[#allocation7 + $0x30] sm:$0xff]   ;;  %v886_v17 = vld [vmem:[#allocation7 + $0x28] sm:$0xff]   ;;  %vm1041_vm1 = vmmov 0   ;;  %vm722_vm2 = vcmask 15360  }
  0x43   :  { %784 = vmatpush3.bf16.msra.mxu0 %v881_v11  ;;  %v877_v15 = vld [vmem:[#allocation4 + $0x8] ss:$16 sps:$4 sm:$0xff]   ;;  %v885_v16 = vld [vmem:[#allocation7 + $0xf8] sm:$0xff]   ;;  %v893_v24 = vld [vmem:[#allocation7 + $0xe8] sm:$0xff]   ;;  %v105_v46 = vsub.s32 0, %v104_v45  ;;  %v109_v48 = vsub.s32 1, %v104_v45 }
  0x44   :  { %182 = vmatpush1.bf16.msra.mxu1 %v873_v4  ;;  %785 = vmatprep.subr.bf16.mxu0 %v882_v12  ;;  %v888_v18 = vld [vmem:[#allocation7 + $0x60] sm:$0xff]   ;;  %v887_v19 = vld [vmem:[#allocation7 + $0xb8] sm:$0xff]   ;;  %v889_v20 = vld [vmem:[#allocation7 + $0xf0] sm:$0xff]   ;;  %v113_v53 = vsub.s32 2, %v104_v45  ;;  %v117_v56 = vsub.s32 3, %v104_v45 }
  0x45   :  { %220 = vmatprep.subr.bf16.mxu1 %v876_v6  ;;  %v890_v21 = vld [vmem:[#allocation7 + $0x20] sm:$0xff]   ;;  %v892_v22 = vld [vmem:[#allocation7 + $0x58] sm:$0xff]   ;;  %v891_v23 = vld [vmem:[#allocation7 + $0xb0] sm:$0xff]  }
  0x46   :  { %v894_v25 = vld [vmem:[#allocation7 + $0x18] sm:$0xff]   ;;  %v896_v26 = vld [vmem:[#allocation7 + $0x50] sm:$0xff]   ;;  %v895_v27 = vld [vmem:[#allocation7 + $0xa8] sm:$0xff]  }
  0x47   :  { %739 = vmatmul.mubr.msk.bf16.vlgmr.msra.gmra.mxu1 %vm163_vm0, %v92_v8  ;;  %786 = vmatpush3.bf16.msra.mxu0 %v883_v13  ;;  %v897_v28 = vld [vmem:[#allocation7 + $0xe0] sm:$0xff]   ;;  %v898_v29 = vld [vmem:[#allocation7 + $0x10] sm:$0xff]   ;;  %v900_v31 = vld [vmem:[#allocation7 + $0x48] sm:$0xff]  }
  0x48   :  { %221 = vmatpush1.bf16.msra.mxu1 %v874_v7  ;;  %240 = vmatprep.mubr.bf16.mxu1 %v1039_v0  ;;  %v899_v30 = vld [vmem:[#allocation7 + $0xa0] sm:$0xff]   ;;  %v901_v32 = vld [vmem:[#allocation7 + $0xd8] sm:$0xff]   ;;  %v902_v33 = vld [vmem:[#allocation7 + $0x8] sm:$0xff]  }
  0x49   :  { %222 = vmatprep.subr.bf16.mxu1 %v879_v9  ;;  %787 = vmatprep.subr.bf16.mxu0 %v884_v14  ;;  %v903_v34 = vld [vmem:[#allocation7 + $0x98] sm:$0xff]   ;;  %v904_v35 = vld [vmem:[#allocation7 + $0x40] sm:$0xff]   ;;  %v905_v36 = vld [vmem:[#allocation7 + $0xd0] sm:$0xff]  }
  0x4a   :  { %v906_v37 = vld [vmem:[#allocation7] sm:$0xff]   ;;  %v907_v38 = vld [vmem:[#allocation7 + $0x90] sm:$0xff]   ;;  %v908_v39 = vld [vmem:[#allocation7 + $0xc8] sm:$0xff]  }
  0x4b   :  { %788 = vmatpush3.bf16.msra.mxu0 %v886_v17  ;;  %v909_v40 = vld [vmem:[#allocation7 + $0x88] sm:$0xff]   ;;  %v910_v41 = vld [vmem:[#allocation7 + $0xc0] sm:$0xff]   ;;  %v101_v47 = vld [vmem:[#allocation6] sm:$0xf] }
  0x4c   :  { %223 = vmatpush1.bf16.msra.mxu1 %v877_v15  ;;  %789 = vmatprep.subr.bf16.mxu0 %v888_v18  ;;  %v911_v42 = vld [vmem:[#allocation7 + $0x80] sm:$0xff]   ;;  %v106_v49 = vrot.slane %v101_v47, %v105_v46  ;;  %v110_v50 = vrot.slane %v101_v47, %v109_v48  ;;  %v114_v59 = vrot.slane %v101_v47, %v113_v53  ;;  %v912_v0 = vld [vmem:[#allocation9 + $0x38] sm:$0xff]   ;;  %v913_v6 = vld [vmem:[#allocation9 + $0x30] sm:$0xff]  }
  0x4d   :  { %805 = vmatprep.subr.bf16.mxu1 %v885_v16  ;;  %v118_v63 = vrot.slane %v101_v47, %v117_v56  ;;  %v914_v12 = vld [vmem:[#allocation9 + $0x28] sm:$0xff]   ;;  %v915_v14 = vld [vmem:[#allocation9 + $0x20] sm:$0xff]   ;;  %v916_v15 = vld [vmem:[#allocation9 + $0x18] sm:$0xff]  }
  0x4e   :  { %v917_v16 = vld [vmem:[#allocation9 + $0x10] sm:$0xff]   ;;  %v918_v17 = vld [vmem:[#allocation9 + $0x8] sm:$0xff]   ;;  %v919_v18 = vld [vmem:[#allocation9] sm:$0xff]  }
  0x4f   :  { %740 = vmatmul.mubr.msk.bf16.vlgmr.msra.gmra.mxu1 %vm163_vm0, %v92_v8  ;;  %790 = vmatpush3.bf16.msra.mxu0 %v890_v21 }
  0x50   :  { %806 = vmatpush3.bf16.msra.mxu1 %v887_v19  ;;  %791 = vmatprep.subr.bf16.mxu0 %v892_v22 }
  0x51   :  { %807 = vmatprep.subr.bf16.mxu1 %v889_v20 }
  0x53   :  { %792 = vmatpush3.bf16.msra.mxu0 %v894_v25 }
  0x54   :  { %808 = vmatpush3.bf16.msra.mxu1 %v891_v23  ;;  %793 = vmatprep.subr.bf16.mxu0 %v896_v26 }
  0x55   :  { %809 = vmatprep.subr.bf16.mxu1 %v893_v24  ;;  %v741_v24 = vld [vmem:[%s1118_s4] ss:$0 sm:$0xff] }
  0x57   :  { %794 = vmatpush3.bf16.msra.mxu0 %v898_v29 }
  0x58   :  { %810 = vmatpush3.bf16.msra.mxu1 %v895_v27  ;;  %795 = vmatprep.subr.bf16.mxu0 %v900_v31 }
  0x59   :  { %811 = vmatprep.subr.bf16.mxu1 %v897_v28 }
  0x5b   :  { %796 = vmatpush3.bf16.msra.mxu0 %v902_v33 }
  0x5c   :  { %812 = vmatpush3.bf16.msra.mxu1 %v899_v30  ;;  %797 = vmatprep.subr.bf16.mxu0 %v904_v35 }
  0x5d   :  { %813 = vmatprep.subr.bf16.mxu1 %v901_v32 }
  0x5f   :  { %798 = vmatpush3.bf16.msra.mxu0 %v906_v37 }
  0x60   :  { %814 = vmatpush3.bf16.msra.mxu1 %v903_v34  ;;  %836 = vmatprep.subr.bf16.mxu0 %v1040_v43  ;;  %v774_v34 = vld [vmem:[%s1120_s6] ss:$0 sm:$0xff] }
  0x61   :  { %815 = vmatprep.subr.bf16.mxu1 %v905_v36 }
  0x64   :  { %816 = vmatpush3.bf16.msra.mxu1 %v907_v38 }
  0x65   :  { %817 = vmatprep.subr.bf16.mxu1 %v908_v39 }
  0x68   :  { %818 = vmatpush3.bf16.msra.mxu1 %v909_v40 }
  0x69   :  { %819 = vmatprep.subr.bf16.mxu1 %v910_v41 }
  0x6c   :  { %820 = vmatpush3.bf16.msra.mxu1 %v911_v42 }
 0x107   :  { %v201_v51 = vpop.f32.mrf.mxu1 }
 0x108   :  { %v202_v52 = vadd.f32 %v201_v51, %v106_v49 }
 0x109   :  { %v203_v54 = vpop.f32.mrf.mxu1 }
 0x10a   :  { %v204_v55 = vadd.f32 %v203_v54, %v110_v50  ;;  %v249_v57 = vmax.f32 %v202_v52, 0.0 }
 0x10b   :  { %v205_v58 = vpop.f32.mrf.mxu1 }
 0x10c   :  { %v250_v60 = vmax.f32 %v204_v55, 0.0  ;;  %v253_v1 = vpack.c.bf16 %v249_v57, %v249_v57 }
 0x10d   :  { %v206_v61 = vpop.f32.mrf.mxu1 }
 0x10e   :  { %v254_v62 = vpack.c.bf16 %v250_v60, %v250_v60 }
 0x10f   :  { %v242_v2 = vpop.f32.mrf.mxu1 }
 0x110   :  { %v243_v3 = vadd.f32 %v242_v2, %v114_v59  ;;  %552 = vmatprep.mubr.bf16.mxu0 %v254_v62 }
 0x111   :  { %v244_v4 = vpop.f32.mrf.mxu1  ;;  %553 = vmatmul.mubr.bf16.vlgmr.msra.gmra.mxu0 %v253_v1 }
 0x112   :  { %v245_v5 = vadd.f32 %v244_v4, %v118_v63  ;;  %837 = vmatpush3.bf16.msra.mxu0 %v912_v0  ;;  %v251_v7 = vmax.f32 %v243_v3, 0.0  ;;  %852 = vmatprep.mubr.msk.bf16.mxu0 %vm1041_vm1, %v1040_v43 }
 0x113   :  { %v246_v8 = vpop.f32.mrf.mxu1  ;;  %838 = vmatprep.subr.bf16.mxu0 %v1040_v43 }
 0x114   :  { %v252_v9 = vmax.f32 %v245_v5, 0.0  ;;  %v255_v13 = vpack.c.bf16 %v251_v7, %v251_v7 }
 0x115   :  { %v247_v10 = vpop.f32.mrf.mxu1 }
 0x116   :  { %v256_v11 = vpack.c.bf16 %v252_v9, %v252_v9  ;;  %839 = vmatpush3.bf16.msra.mxu0 %v913_v6 }
 0x117   :  { %840 = vmatprep.subr.bf16.mxu0 %v1040_v43 }
 0x118   :  { %592 = vmatprep.mubr.bf16.mxu1 %v256_v11 }
 0x119   :  { %593 = vmatmul.mubr.bf16.vlgmr.msra.gmra.mxu1 %v255_v13 }
 0x11a   :  { %841 = vmatpush3.bf16.msra.mxu0 %v914_v12 }
 0x11b   :  { %842 = vmatprep.subr.bf16.mxu0 %v1040_v43 }
 0x11e   :  { %843 = vmatpush3.bf16.msra.mxu0 %v915_v14 }
 0x11f   :  { %844 = vmatprep.subr.bf16.mxu0 %v1040_v43 }
 0x122   :  { %845 = vmatpush3.bf16.msra.mxu0 %v916_v15 }
 0x123   :  { %846 = vmatprep.subr.bf16.mxu0 %v1040_v43 }
 0x126   :  { %847 = vmatpush3.bf16.msra.mxu0 %v917_v16 }
 0x127   :  { %848 = vmatprep.subr.bf16.mxu0 %v1040_v43 }
 0x12a   :  { %849 = vmatpush3.bf16.msra.mxu0 %v918_v17 }
 0x12b   :  { %850 = vmatprep.subr.bf16.mxu0 %v1040_v43 }
 0x12e   :  { %851 = vmatpush3.bf16.msra.mxu0 %v919_v18 }
 0x1d1   :  { %v799_v19 = vpop.f32.mrf.mxu0 }
 0x1d3   :  { %v800_v20 = vpop.f32.mrf.mxu0 }
 0x1d4   :  { %v801_v23 = vadd.f32 %v800_v20, %v799_v19 }
 0x1d5   :  { %v802_v21 = vpop.f32.mrf.mxu0 }
 0x1d6   :  { %v555_v27 = vadd.f32 %v801_v23, %v741_v24 }
 0x1d7   :  { %v803_v22 = vpop.f32.mrf.mxu0 }
 0x1d9   :  { %v821_v25 = vpop.f32.mrf.mxu1 }
 0x1db   :  { %v822_v26 = vpop.f32.mrf.mxu1 }
 0x1dc   :  { %v823_v28 = vadd.f32 %v822_v26, %v821_v25 }
 0x1dd   :  { %v824_v29 = vpop.f32.mrf.mxu1 }
 0x1de   :  { %v595_v30 = vadd.f32 %v823_v28, %v555_v27 }
 0x1df   :  { %v825_v31 = vpop.f32.mrf.mxu1 }
 0x1e0   :  { %v600_v32 = vmax.f32 %v595_v30, 0.0 }
 0x1e2   :  { %v601_v33 = vpack.c.bf16 %v600_v32, %v600_v32 }
 0x1e4   :  { %853 = vmatmul.mubr.bf16.vlgmr.msra.gmra.mxu0 %v601_v33 }
 0x2a4   :  { %v707_v35 = vpop.f32.mrf.mxu0 }
 0x2a5   :  { %v708_v36 = vadd.f32 %v774_v34, %v707_v35 }
 0x2a6   :  { %v854_v37 = vpop.f32.mrf.mxu0 }
 0x2a7   :  { %713 = vmax.xlane.f32.xlu0 %v708_v36 }
 0x2a8   :  { %v710_v38 = vpop.f32.mrf.mxu0 }
 0x2aa   :  { %v855_v39 = vpop.f32.mrf.mxu0 }
 0x330   :  { %v714_v40 = vpop.xlane.xlu0 %713 }
 0x331   :  { %v715_v41 = vsub.f32 %v708_v36, %v714_v40 }
 0x333   :  { %v716_v42 = vmul.f32 1.442695, %v715_v41 }
 0x335   :  { %920 = vpow2.f32 %v716_v42 }
 0x342   :  { %v921_v43 = vpop.eup %920 }
 0x343   :  { %718 = vadd.xlane.f32.xlu0 %v921_v43 }
 0x3cc   :  { %v719_v44 = vpop.xlane.xlu0 %718 }
 0x3cd   :  { %922 = vrcp.f32 %v719_v44 }
 0x3da   :  { %v923_v45 = vpop.eup %922 }
 0x3db   :  { %v721_v46 = vmul.f32 %v923_v45, %v921_v43 }
 0x3dd   :  { %723 = vst.msk [vmem:[%s1121_s7] sm:$0xff] %vm722_vm2, %v721_v46 }
 0x3de   :  { %728 = vsyncpa [#allocation3], 1 }
 0x3df   :  { %729 = vsyncpa [#allocation5], 1 }
 0x3e0   :  { %730 = vsyncpa [#allocation8], 1 }

</bundles_post_ra>
